<compile_context>
chip_gen: v5e
topology: v5e:2x2
jax: 0.10.0
libtpu: 0.0.40
codegen_flags: <defaults>
</compile_context>

<pallas_src>
import functools
import math

import jax
import jax.numpy as jnp
from jax.experimental import pallas as pl
from jax.experimental.pallas import tpu as pltpu


def _gelu_exact(x):
    # PyTorch nn.GELU() default = exact erf formulation.
    return 0.5 * x * (1.0 + jax.lax.erf(x / jnp.sqrt(2.0).astype(x.dtype)))


def _layernorm(x, gamma, beta, eps):
    mu = jnp.mean(x, axis=-1, keepdims=True)
    xc = x - mu
    var = jnp.mean(xc * xc, axis=-1, keepdims=True)
    return xc * jax.lax.rsqrt(var + eps) * gamma + beta


def block_kernel(x_ref,
                 ln1_g_ref, ln1_b_ref,
                 wqkv_ref, bqkv_ref, wproj_ref, bproj_ref,
                 ln2_g_ref, ln2_b_ref,
                 wfc1_ref, bfc1_ref, wfc2_ref, bfc2_ref,
                 o_ref, *, num_heads, scale, eps, matmul_dtype):
    x = x_ref[0].astype(jnp.float32)               # (N, C) — one batch element
    N, C = x.shape
    H = num_heads
    Dh = C // H

    # ---- LayerNorm 1 ----
    h = _layernorm(x, ln1_g_ref[...], ln1_b_ref[...], eps)

    # ---- Attention: fused qkv projection ----
    qkv = jnp.dot(h.astype(matmul_dtype), wqkv_ref[...].astype(matmul_dtype),
                  preferred_element_type=jnp.float32) + bqkv_ref[...]   # (N, 3C)

    # Per-head attention.  Heads are contiguous Dh-wide blocks along the
    # feature axis (matches torch's reshape(B, N, 3, H, C//H)); a short static
    # loop over heads keeps every matmul a plain 2-D lane-dense dot.
    y_heads = []
    for hi in range(H):
        qh = qkv[:, hi * Dh:(hi + 1) * Dh]                      # (N, Dh)
        kh = qkv[:, C + hi * Dh: C + (hi + 1) * Dh]             # (N, Dh)
        vh = qkv[:, 2 * C + hi * Dh: 2 * C + (hi + 1) * Dh]     # (N, Dh)

        a = jnp.dot(qh.astype(matmul_dtype), kh.astype(matmul_dtype).T,
                    preferred_element_type=jnp.float32) * scale          # (N, N)
        a = a - jnp.max(a, axis=-1, keepdims=True)
        a = jnp.exp(a)
        a = a / jnp.sum(a, axis=-1, keepdims=True)                       # softmax
        y_heads.append(jnp.dot(a.astype(matmul_dtype), vh.astype(matmul_dtype),
                               preferred_element_type=jnp.float32))      # (N, Dh)
    y = jnp.concatenate(y_heads, axis=1)                                 # (N, C)

    # ---- Attention output projection ----
    y = jnp.dot(y.astype(matmul_dtype), wproj_ref[...].astype(matmul_dtype),
                preferred_element_type=jnp.float32) + bproj_ref[...]

    # ---- Residual 1 (drop_path == identity at drop_prob=0 / eval) ----
    x = x + y

    # ---- LayerNorm 2 + MLP ----
    h2 = _layernorm(x, ln2_g_ref[...], ln2_b_ref[...], eps)
    m = jnp.dot(h2.astype(matmul_dtype), wfc1_ref[...].astype(matmul_dtype),
                preferred_element_type=jnp.float32) + bfc1_ref[...]
    m = _gelu_exact(m)
    m = jnp.dot(m.astype(matmul_dtype), wfc2_ref[...].astype(matmul_dtype),
                preferred_element_type=jnp.float32) + bfc2_ref[...]

    # ---- Residual 2 ----
    o_ref[0] = (x + m).astype(o_ref.dtype)


def block_forward(x, params, *, num_heads, eps=1e-5, matmul_dtype=jnp.float32):
    """x: (B, N, C) float32.  params: dict of pre-transposed weights / row biases."""
    B, N, C = x.shape
    Dh = C // num_heads
    scale = float(Dh) ** -0.5

    weights = (params["ln1_g"], params["ln1_b"],
               params["wqkv_t"], params["bqkv"],
               params["wproj_t"], params["bproj"],
               params["ln2_g"], params["ln2_b"],
               params["wfc1_t"], params["bfc1"],
               params["wfc2_t"], params["bfc2"])

    def resident(arr):
        # Full-array block with a constant index_map: DMA'd once, stays in VMEM
        # across all batch-grid steps.
        return pl.BlockSpec(arr.shape, lambda b, _nd=arr.ndim: (0,) * _nd)

    kernel = functools.partial(block_kernel, num_heads=num_heads, scale=scale,
                               eps=eps, matmul_dtype=matmul_dtype)

    return pl.pallas_call(
        kernel,
        out_shape=jax.ShapeDtypeStruct((B, N, C), x.dtype),
        grid_spec=pltpu.PrefetchScalarGridSpec(
            num_scalar_prefetch=0,
            grid=(B,),
            in_specs=[pl.BlockSpec((1, N, C), lambda b: (b, 0, 0))]
                     + [resident(w) for w in weights],
            out_specs=pl.BlockSpec((1, N, C), lambda b: (b, 0, 0)),
        ),
        compiler_params=pltpu.CompilerParams(
            dimension_semantics=("parallel",)),
    )(x, *weights)


def init_block_params(key, dim, num_heads, mlp_ratio=4.0, qkv_bias=True):
    """Deterministic synthetic init with the Block's parameter shapes.

    Linear weights are stored already transposed to (in, out); biases as (1, out).
    """
    hidden = int(dim * mlp_ratio)
    ks = jax.random.split(key, 8)

    def tn(k, shape, std=0.02):
        return std * jax.random.truncated_normal(k, -2.0, 2.0, shape, jnp.float32)

    return {
        "ln1_g": jnp.ones((1, dim), jnp.float32),
        "ln1_b": jnp.zeros((1, dim), jnp.float32),
        "wqkv_t": tn(ks[0], (dim, 3 * dim), std=0.2),
        "bqkv": (tn(ks[1], (1, 3 * dim), std=0.05) if qkv_bias
                 else jnp.zeros((1, 3 * dim), jnp.float32)),
        "wproj_t": tn(ks[2], (dim, dim), std=0.1),
        "bproj": tn(ks[3], (1, dim), std=0.05),
        "ln2_g": jnp.ones((1, dim), jnp.float32),
        "ln2_b": jnp.zeros((1, dim), jnp.float32),
        "wfc1_t": tn(ks[4], (dim, hidden), std=0.1),
        "bfc1": tn(ks[5], (1, hidden), std=0.05),
        "wfc2_t": tn(ks[6], (hidden, dim), std=0.1),
        "bfc2": tn(ks[7], (1, dim), std=0.05),
    }


def _reference_forward(x, p, *, num_heads, eps=1e-5):
    # Pure-JAX reference mirroring the PyTorch Block forward (eval mode).
    B, N, C = x.shape
    H = num_heads
    Dh = C // H

    def ln(t, g, b):
        mu = jnp.mean(t, axis=-1, keepdims=True)
        var = jnp.mean((t - mu) ** 2, axis=-1, keepdims=True)
        return (t - mu) / jnp.sqrt(var + eps) * g + b

    h = ln(x, p["ln1_g"], p["ln1_b"])
    qkv = h @ p["wqkv_t"] + p["bqkv"]                        # (B, N, 3C)
    qkv = qkv.reshape(B, N, 3, H, Dh).transpose(2, 0, 3, 1, 4)
    q, k, v = qkv[0], qkv[1], qkv[2]                          # (B, H, N, Dh)
    attn = jnp.einsum("bhnd,bhmd->bhnm", q, k) * (float(Dh) ** -0.5)
    attn = jax.nn.softmax(attn, axis=-1)
    y = jnp.einsum("bhnm,bhmd->bhnd", attn, v)
    y = y.transpose(0, 2, 1, 3).reshape(B, N, C)
    y = y @ p["wproj_t"] + p["bproj"]
    x = x + y
    h2 = ln(x, p["ln2_g"], p["ln2_b"])
    m = jax.nn.gelu(h2 @ p["wfc1_t"] + p["bfc1"], approximate=False)
    m = m @ p["wfc2_t"] + p["bfc2"]
    return x + m


if __name__ == "__main__":
    # Small shapes consistent with the module: batch=2, seq=8, dim=32, heads=4,
    # mlp_ratio=4 -> mlp hidden = 128.
    B, N, C, H = 2, 8, 32, 4

    key = jax.random.PRNGKey(0)
    kx, kp = jax.random.split(key)
    x = jax.random.normal(kx, (B, N, C), jnp.float32)
    params = init_block_params(kp, C, H, mlp_ratio=4.0, qkv_bias=True)

    y = block_forward(x, params, num_heads=H)        # matmul_dtype=f32 for the check;
    y = jax.block_until_ready(y)                     # use jnp.bfloat16 at real ViT sizes.

    y_ref = _reference_forward(x, params, num_heads=H)
    assert y.shape == (B, N, C)
    assert jnp.allclose(y, y_ref, atol=1e-4, rtol=1e-4), "mismatch vs JAX reference"

    print("KERNEL_OK")
</pallas_src>

<mosaic_0001>
module attributes {stable_mosaic.version = 11 : i64} {
  func.func @block_kernel(%arg0: i32, %arg1: memref<1x8x32xf32, #tpu.memory_space<vmem>>, %arg2: memref<1x32xf32, #tpu.memory_space<vmem>>, %arg3: memref<1x32xf32, #tpu.memory_space<vmem>>, %arg4: memref<32x96xf32, #tpu.memory_space<vmem>>, %arg5: memref<1x96xf32, #tpu.memory_space<vmem>>, %arg6: memref<32x32xf32, #tpu.memory_space<vmem>>, %arg7: memref<1x32xf32, #tpu.memory_space<vmem>>, %arg8: memref<1x32xf32, #tpu.memory_space<vmem>>, %arg9: memref<1x32xf32, #tpu.memory_space<vmem>>, %arg10: memref<32x128xf32, #tpu.memory_space<vmem>>, %arg11: memref<1x128xf32, #tpu.memory_space<vmem>>, %arg12: memref<128x32xf32, #tpu.memory_space<vmem>>, %arg13: memref<1x32xf32, #tpu.memory_space<vmem>>, %arg14: memref<1x8x32xf32, #tpu.memory_space<vmem>>) attributes {dimension_semantics = [#tpu.dimension_semantics<parallel>], iteration_bounds = array<i64: 2>, scalar_prefetch = 0 : i64, scratch_operands = 0 : i64, tpu.core_type = #tpu.core_type<tc>, window_params = [{transform_indices = @transform_0, window_bounds = array<i64: 1, 8, 32>}, {pipeline_mode = #tpu.pipeline_mode<synchronous>, transform_indices = @transform_1, window_bounds = array<i64: 1, 32>}, {pipeline_mode = #tpu.pipeline_mode<synchronous>, transform_indices = @transform_2, window_bounds = array<i64: 1, 32>}, {pipeline_mode = #tpu.pipeline_mode<synchronous>, transform_indices = @transform_3, window_bounds = array<i64: 32, 96>}, {pipeline_mode = #tpu.pipeline_mode<synchronous>, transform_indices = @transform_4, window_bounds = array<i64: 1, 96>}, {pipeline_mode = #tpu.pipeline_mode<synchronous>, transform_indices = @transform_5, window_bounds = array<i64: 32, 32>}, {pipeline_mode = #tpu.pipeline_mode<synchronous>, transform_indices = @transform_6, window_bounds = array<i64: 1, 32>}, {pipeline_mode = #tpu.pipeline_mode<synchronous>, transform_indices = @transform_7, window_bounds = array<i64: 1, 32>}, {pipeline_mode = #tpu.pipeline_mode<synchronous>, transform_indices = @transform_8, window_bounds = array<i64: 1, 32>}, {pipeline_mode = #tpu.pipeline_mode<synchronous>, transform_indices = @transform_9, window_bounds = array<i64: 32, 128>}, {pipeline_mode = #tpu.pipeline_mode<synchronous>, transform_indices = @transform_10, window_bounds = array<i64: 1, 128>}, {pipeline_mode = #tpu.pipeline_mode<synchronous>, transform_indices = @transform_11, window_bounds = array<i64: 128, 32>}, {pipeline_mode = #tpu.pipeline_mode<synchronous>, transform_indices = @transform_12, window_bounds = array<i64: 1, 32>}, {transform_indices = @transform_13, window_bounds = array<i64: 1, 8, 32>}]} {
    %c0 = arith.constant 0 : index
    %c0_0 = arith.constant 0 : index
    %c0_1 = arith.constant 0 : index
    %0 = vector.load %arg1[%c0, %c0_0, %c0_1] : memref<1x8x32xf32, #tpu.memory_space<vmem>>, vector<1x8x32xf32>
    %1 = vector.shape_cast %0 : vector<1x8x32xf32> to vector<8x32xf32>
    %c0_2 = arith.constant 0 : index
    %c0_3 = arith.constant 0 : index
    %2 = vector.load %arg2[%c0_2, %c0_3] : memref<1x32xf32, #tpu.memory_space<vmem>>, vector<1x32xf32>
    %c0_4 = arith.constant 0 : index
    %c0_5 = arith.constant 0 : index
    %3 = vector.load %arg3[%c0_4, %c0_5] : memref<1x32xf32, #tpu.memory_space<vmem>>, vector<1x32xf32>
    %cst = arith.constant dense<0.000000e+00> : vector<8xf32>
    %4 = vector.multi_reduction <add>, %1, %cst [1] : vector<8x32xf32> to vector<8xf32>
    %5 = vector.shape_cast %4 : vector<8xf32> to vector<8x1xf32>
    %cst_6 = arith.constant 3.200000e+01 : f32
    %6 = vector.broadcast %cst_6 : f32 to vector<8x1xf32>
    %7 = arith.divf %5, %6 : vector<8x1xf32>
    %8 = vector.broadcast %7 : vector<8x1xf32> to vector<8x32xf32>
    %9 = arith.subf %1, %8 : vector<8x32xf32>
    %10 = arith.mulf %9, %9 : vector<8x32xf32>
    %cst_7 = arith.constant dense<0.000000e+00> : vector<8xf32>
    %11 = vector.multi_reduction <add>, %10, %cst_7 [1] : vector<8x32xf32> to vector<8xf32>
    %12 = vector.shape_cast %11 : vector<8xf32> to vector<8x1xf32>
    %cst_8 = arith.constant 3.200000e+01 : f32
    %13 = vector.broadcast %cst_8 : f32 to vector<8x1xf32>
    %14 = arith.divf %12, %13 : vector<8x1xf32>
    %cst_9 = arith.constant 9.99999974E-6 : f32
    %15 = vector.broadcast %cst_9 : f32 to vector<8x1xf32>
    %16 = arith.addf %14, %15 : vector<8x1xf32>
    %17 = math.rsqrt %16 : vector<8x1xf32>
    %18 = vector.broadcast %17 : vector<8x1xf32> to vector<8x32xf32>
    %19 = arith.mulf %9, %18 : vector<8x32xf32>
    %20 = vector.broadcast %2 : vector<1x32xf32> to vector<8x32xf32>
    %21 = arith.mulf %19, %20 : vector<8x32xf32>
    %22 = vector.broadcast %3 : vector<1x32xf32> to vector<8x32xf32>
    %23 = arith.addf %21, %22 : vector<8x32xf32>
    %c0_10 = arith.constant 0 : index
    %c0_11 = arith.constant 0 : index
    %24 = vector.load %arg4[%c0_10, %c0_11] : memref<32x96xf32, #tpu.memory_space<vmem>>, vector<32x96xf32>
    %cst_12 = arith.constant dense<0.000000e+00> : vector<8x96xf32>
    %25 = tpu.matmul %23, %24, %cst_12 {dimension_numbers = #tpu.dot_dimension_numbers<[1], [0], [0], [1], [0, 0, 1, 1], [], []>} : vector<8x32xf32>, vector<32x96xf32>, vector<8x96xf32> -> vector<8x96xf32>
    %c0_13 = arith.constant 0 : index
    %c0_14 = arith.constant 0 : index
    %26 = vector.load %arg5[%c0_13, %c0_14] : memref<1x96xf32, #tpu.memory_space<vmem>>, vector<1x96xf32>
    %27 = vector.broadcast %26 : vector<1x96xf32> to vector<8x96xf32>
    %28 = arith.addf %25, %27 : vector<8x96xf32>
    %29 = vector.extract_strided_slice %28 {offsets = [0, 0], sizes = [8, 8], strides = [1, 1]} : vector<8x96xf32> to vector<8x8xf32>
    %30 = vector.extract_strided_slice %28 {offsets = [0, 32], sizes = [8, 8], strides = [1, 1]} : vector<8x96xf32> to vector<8x8xf32>
    %31 = vector.extract_strided_slice %28 {offsets = [0, 64], sizes = [8, 8], strides = [1, 1]} : vector<8x96xf32> to vector<8x8xf32>
    %32 = tpu.transpose %30, [1, 0] : vector<8x8xf32> -> vector<8x8xf32>
    %cst_15 = arith.constant dense<0.000000e+00> : vector<8x8xf32>
    %33 = tpu.matmul %29, %32, %cst_15 {dimension_numbers = #tpu.dot_dimension_numbers<[1], [0], [0], [1], [0, 0, 1, 1], [], []>} : vector<8x8xf32>, vector<8x8xf32>, vector<8x8xf32> -> vector<8x8xf32>
    %cst_16 = arith.constant 0.353553385 : f32
    %34 = vector.broadcast %cst_16 : f32 to vector<8x8xf32>
    %35 = arith.mulf %33, %34 : vector<8x8xf32>
    %cst_17 = arith.constant dense<0xFF800000> : vector<8xf32>
    %36 = vector.multi_reduction <maximumf>, %35, %cst_17 [1] : vector<8x8xf32> to vector<8xf32>
    %37 = vector.shape_cast %36 : vector<8xf32> to vector<8x1xf32>
    %38 = vector.broadcast %37 : vector<8x1xf32> to vector<8x8xf32>
    %39 = arith.subf %35, %38 : vector<8x8xf32>
    %40 = math.exp %39 : vector<8x8xf32>
    %cst_18 = arith.constant dense<0.000000e+00> : vector<8xf32>
    %41 = vector.multi_reduction <add>, %40, %cst_18 [1] : vector<8x8xf32> to vector<8xf32>
    %42 = vector.shape_cast %41 : vector<8xf32> to vector<8x1xf32>
    %43 = vector.broadcast %42 : vector<8x1xf32> to vector<8x8xf32>
    %44 = arith.divf %40, %43 : vector<8x8xf32>
    %cst_19 = arith.constant dense<0.000000e+00> : vector<8x8xf32>
    %45 = tpu.matmul %44, %31, %cst_19 {dimension_numbers = #tpu.dot_dimension_numbers<[1], [0], [0], [1], [0, 0, 1, 1], [], []>} : vector<8x8xf32>, vector<8x8xf32>, vector<8x8xf32> -> vector<8x8xf32>
    %46 = vector.extract_strided_slice %28 {offsets = [0, 8], sizes = [8, 8], strides = [1, 1]} : vector<8x96xf32> to vector<8x8xf32>
    %47 = vector.extract_strided_slice %28 {offsets = [0, 40], sizes = [8, 8], strides = [1, 1]} : vector<8x96xf32> to vector<8x8xf32>
    %48 = vector.extract_strided_slice %28 {offsets = [0, 72], sizes = [8, 8], strides = [1, 1]} : vector<8x96xf32> to vector<8x8xf32>
    %49 = tpu.transpose %47, [1, 0] : vector<8x8xf32> -> vector<8x8xf32>
    %cst_20 = arith.constant dense<0.000000e+00> : vector<8x8xf32>
    %50 = tpu.matmul %46, %49, %cst_20 {dimension_numbers = #tpu.dot_dimension_numbers<[1], [0], [0], [1], [0, 0, 1, 1], [], []>} : vector<8x8xf32>, vector<8x8xf32>, vector<8x8xf32> -> vector<8x8xf32>
    %cst_21 = arith.constant 0.353553385 : f32
    %51 = vector.broadcast %cst_21 : f32 to vector<8x8xf32>
    %52 = arith.mulf %50, %51 : vector<8x8xf32>
    %cst_22 = arith.constant dense<0xFF800000> : vector<8xf32>
    %53 = vector.multi_reduction <maximumf>, %52, %cst_22 [1] : vector<8x8xf32> to vector<8xf32>
    %54 = vector.shape_cast %53 : vector<8xf32> to vector<8x1xf32>
    %55 = vector.broadcast %54 : vector<8x1xf32> to vector<8x8xf32>
    %56 = arith.subf %52, %55 : vector<8x8xf32>
    %57 = math.exp %56 : vector<8x8xf32>
    %cst_23 = arith.constant dense<0.000000e+00> : vector<8xf32>
    %58 = vector.multi_reduction <add>, %57, %cst_23 [1] : vector<8x8xf32> to vector<8xf32>
    %59 = vector.shape_cast %58 : vector<8xf32> to vector<8x1xf32>
    %60 = vector.broadcast %59 : vector<8x1xf32> to vector<8x8xf32>
    %61 = arith.divf %57, %60 : vector<8x8xf32>
    %cst_24 = arith.constant dense<0.000000e+00> : vector<8x8xf32>
    %62 = tpu.matmul %61, %48, %cst_24 {dimension_numbers = #tpu.dot_dimension_numbers<[1], [0], [0], [1], [0, 0, 1, 1], [], []>} : vector<8x8xf32>, vector<8x8xf32>, vector<8x8xf32> -> vector<8x8xf32>
    %63 = vector.extract_strided_slice %28 {offsets = [0, 16], sizes = [8, 8], strides = [1, 1]} : vector<8x96xf32> to vector<8x8xf32>
    %64 = vector.extract_strided_slice %28 {offsets = [0, 48], sizes = [8, 8], strides = [1, 1]} : vector<8x96xf32> to vector<8x8xf32>
    %65 = vector.extract_strided_slice %28 {offsets = [0, 80], sizes = [8, 8], strides = [1, 1]} : vector<8x96xf32> to vector<8x8xf32>
    %66 = tpu.transpose %64, [1, 0] : vector<8x8xf32> -> vector<8x8xf32>
    %cst_25 = arith.constant dense<0.000000e+00> : vector<8x8xf32>
    %67 = tpu.matmul %63, %66, %cst_25 {dimension_numbers = #tpu.dot_dimension_numbers<[1], [0], [0], [1], [0, 0, 1, 1], [], []>} : vector<8x8xf32>, vector<8x8xf32>, vector<8x8xf32> -> vector<8x8xf32>
    %cst_26 = arith.constant 0.353553385 : f32
    %68 = vector.broadcast %cst_26 : f32 to vector<8x8xf32>
    %69 = arith.mulf %67, %68 : vector<8x8xf32>
    %cst_27 = arith.constant dense<0xFF800000> : vector<8xf32>
    %70 = vector.multi_reduction <maximumf>, %69, %cst_27 [1] : vector<8x8xf32> to vector<8xf32>
    %71 = vector.shape_cast %70 : vector<8xf32> to vector<8x1xf32>
    %72 = vector.broadcast %71 : vector<8x1xf32> to vector<8x8xf32>
    %73 = arith.subf %69, %72 : vector<8x8xf32>
    %74 = math.exp %73 : vector<8x8xf32>
    %cst_28 = arith.constant dense<0.000000e+00> : vector<8xf32>
    %75 = vector.multi_reduction <add>, %74, %cst_28 [1] : vector<8x8xf32> to vector<8xf32>
    %76 = vector.shape_cast %75 : vector<8xf32> to vector<8x1xf32>
    %77 = vector.broadcast %76 : vector<8x1xf32> to vector<8x8xf32>
    %78 = arith.divf %74, %77 : vector<8x8xf32>
    %cst_29 = arith.constant dense<0.000000e+00> : vector<8x8xf32>
    %79 = tpu.matmul %78, %65, %cst_29 {dimension_numbers = #tpu.dot_dimension_numbers<[1], [0], [0], [1], [0, 0, 1, 1], [], []>} : vector<8x8xf32>, vector<8x8xf32>, vector<8x8xf32> -> vector<8x8xf32>
    %80 = vector.extract_strided_slice %28 {offsets = [0, 24], sizes = [8, 8], strides = [1, 1]} : vector<8x96xf32> to vector<8x8xf32>
    %81 = vector.extract_strided_slice %28 {offsets = [0, 56], sizes = [8, 8], strides = [1, 1]} : vector<8x96xf32> to vector<8x8xf32>
    %82 = vector.extract_strided_slice %28 {offsets = [0, 88], sizes = [8, 8], strides = [1, 1]} : vector<8x96xf32> to vector<8x8xf32>
    %83 = tpu.transpose %81, [1, 0] : vector<8x8xf32> -> vector<8x8xf32>
    %cst_30 = arith.constant dense<0.000000e+00> : vector<8x8xf32>
    %84 = tpu.matmul %80, %83, %cst_30 {dimension_numbers = #tpu.dot_dimension_numbers<[1], [0], [0], [1], [0, 0, 1, 1], [], []>} : vector<8x8xf32>, vector<8x8xf32>, vector<8x8xf32> -> vector<8x8xf32>
    %cst_31 = arith.constant 0.353553385 : f32
    %85 = vector.broadcast %cst_31 : f32 to vector<8x8xf32>
    %86 = arith.mulf %84, %85 : vector<8x8xf32>
    %cst_32 = arith.constant dense<0xFF800000> : vector<8xf32>
    %87 = vector.multi_reduction <maximumf>, %86, %cst_32 [1] : vector<8x8xf32> to vector<8xf32>
    %88 = vector.shape_cast %87 : vector<8xf32> to vector<8x1xf32>
    %89 = vector.broadcast %88 : vector<8x1xf32> to vector<8x8xf32>
    %90 = arith.subf %86, %89 : vector<8x8xf32>
    %91 = math.exp %90 : vector<8x8xf32>
    %cst_33 = arith.constant dense<0.000000e+00> : vector<8xf32>
    %92 = vector.multi_reduction <add>, %91, %cst_33 [1] : vector<8x8xf32> to vector<8xf32>
    %93 = vector.shape_cast %92 : vector<8xf32> to vector<8x1xf32>
    %94 = vector.broadcast %93 : vector<8x1xf32> to vector<8x8xf32>
    %95 = arith.divf %91, %94 : vector<8x8xf32>
    %cst_34 = arith.constant dense<0.000000e+00> : vector<8x8xf32>
    %96 = tpu.matmul %95, %82, %cst_34 {dimension_numbers = #tpu.dot_dimension_numbers<[1], [0], [0], [1], [0, 0, 1, 1], [], []>} : vector<8x8xf32>, vector<8x8xf32>, vector<8x8xf32> -> vector<8x8xf32>
    %97 = tpu.concatenate %45, %62, %79, %96 in 1 : vector<8x8xf32>, vector<8x8xf32>, vector<8x8xf32>, vector<8x8xf32> -> vector<8x32xf32>
    %c0_35 = arith.constant 0 : index
    %c0_36 = arith.constant 0 : index
    %98 = vector.load %arg6[%c0_35, %c0_36] : memref<32x32xf32, #tpu.memory_space<vmem>>, vector<32x32xf32>
    %cst_37 = arith.constant dense<0.000000e+00> : vector<8x32xf32>
    %99 = tpu.matmul %97, %98, %cst_37 {dimension_numbers = #tpu.dot_dimension_numbers<[1], [0], [0], [1], [0, 0, 1, 1], [], []>} : vector<8x32xf32>, vector<32x32xf32>, vector<8x32xf32> -> vector<8x32xf32>
    %c0_38 = arith.constant 0 : index
    %c0_39 = arith.constant 0 : index
    %100 = vector.load %arg7[%c0_38, %c0_39] : memref<1x32xf32, #tpu.memory_space<vmem>>, vector<1x32xf32>
    %101 = vector.broadcast %100 : vector<1x32xf32> to vector<8x32xf32>
    %102 = arith.addf %99, %101 : vector<8x32xf32>
    %103 = arith.addf %1, %102 : vector<8x32xf32>
    %c0_40 = arith.constant 0 : index
    %c0_41 = arith.constant 0 : index
    %104 = vector.load %arg8[%c0_40, %c0_41] : memref<1x32xf32, #tpu.memory_space<vmem>>, vector<1x32xf32>
    %c0_42 = arith.constant 0 : index
    %c0_43 = arith.constant 0 : index
    %105 = vector.load %arg9[%c0_42, %c0_43] : memref<1x32xf32, #tpu.memory_space<vmem>>, vector<1x32xf32>
    %cst_44 = arith.constant dense<0.000000e+00> : vector<8xf32>
    %106 = vector.multi_reduction <add>, %103, %cst_44 [1] : vector<8x32xf32> to vector<8xf32>
    %107 = vector.shape_cast %106 : vector<8xf32> to vector<8x1xf32>
    %cst_45 = arith.constant 3.200000e+01 : f32
    %108 = vector.broadcast %cst_45 : f32 to vector<8x1xf32>
    %109 = arith.divf %107, %108 : vector<8x1xf32>
    %110 = vector.broadcast %109 : vector<8x1xf32> to vector<8x32xf32>
    %111 = arith.subf %103, %110 : vector<8x32xf32>
    %112 = arith.mulf %111, %111 : vector<8x32xf32>
    %cst_46 = arith.constant dense<0.000000e+00> : vector<8xf32>
    %113 = vector.multi_reduction <add>, %112, %cst_46 [1] : vector<8x32xf32> to vector<8xf32>
    %114 = vector.shape_cast %113 : vector<8xf32> to vector<8x1xf32>
    %cst_47 = arith.constant 3.200000e+01 : f32
    %115 = vector.broadcast %cst_47 : f32 to vector<8x1xf32>
    %116 = arith.divf %114, %115 : vector<8x1xf32>
    %cst_48 = arith.constant 9.99999974E-6 : f32
    %117 = vector.broadcast %cst_48 : f32 to vector<8x1xf32>
    %118 = arith.addf %116, %117 : vector<8x1xf32>
    %119 = math.rsqrt %118 : vector<8x1xf32>
    %120 = vector.broadcast %119 : vector<8x1xf32> to vector<8x32xf32>
    %121 = arith.mulf %111, %120 : vector<8x32xf32>
    %122 = vector.broadcast %104 : vector<1x32xf32> to vector<8x32xf32>
    %123 = arith.mulf %121, %122 : vector<8x32xf32>
    %124 = vector.broadcast %105 : vector<1x32xf32> to vector<8x32xf32>
    %125 = arith.addf %123, %124 : vector<8x32xf32>
    %c0_49 = arith.constant 0 : index
    %c0_50 = arith.constant 0 : index
    %126 = vector.load %arg10[%c0_49, %c0_50] : memref<32x128xf32, #tpu.memory_space<vmem>>, vector<32x128xf32>
    %cst_51 = arith.constant dense<0.000000e+00> : vector<8x128xf32>
    %127 = tpu.matmul %125, %126, %cst_51 {dimension_numbers = #tpu.dot_dimension_numbers<[1], [0], [0], [1], [0, 0, 1, 1], [], []>} : vector<8x32xf32>, vector<32x128xf32>, vector<8x128xf32> -> vector<8x128xf32>
    %c0_52 = arith.constant 0 : index
    %c0_53 = arith.constant 0 : index
    %128 = vector.load %arg11[%c0_52, %c0_53] : memref<1x128xf32, #tpu.memory_space<vmem>>, vector<1x128xf32>
    %129 = vector.broadcast %128 : vector<1x128xf32> to vector<8x128xf32>
    %130 = arith.addf %127, %129 : vector<8x128xf32>
    %cst_54 = arith.constant 5.000000e-01 : f32
    %131 = vector.broadcast %cst_54 : f32 to vector<8x128xf32>
    %132 = arith.mulf %131, %130 : vector<8x128xf32>
    %cst_55 = arith.constant 2.000000e+00 : f32
    %133 = math.sqrt %cst_55 : f32
    %134 = vector.broadcast %133 : f32 to vector<8x128xf32>
    %135 = arith.divf %130, %134 : vector<8x128xf32>
    %136 = math.erf %135 : vector<8x128xf32>
    %cst_56 = arith.constant 1.000000e+00 : f32
    %137 = vector.broadcast %cst_56 : f32 to vector<8x128xf32>
    %138 = arith.addf %137, %136 : vector<8x128xf32>
    %139 = arith.mulf %132, %138 : vector<8x128xf32>
    %c0_57 = arith.constant 0 : index
    %c0_58 = arith.constant 0 : index
    %140 = vector.load %arg12[%c0_57, %c0_58] : memref<128x32xf32, #tpu.memory_space<vmem>>, vector<128x32xf32>
    %cst_59 = arith.constant dense<0.000000e+00> : vector<8x32xf32>
    %141 = tpu.matmul %139, %140, %cst_59 {dimension_numbers = #tpu.dot_dimension_numbers<[1], [0], [0], [1], [0, 0, 1, 1], [], []>} : vector<8x128xf32>, vector<128x32xf32>, vector<8x32xf32> -> vector<8x32xf32>
    %c0_60 = arith.constant 0 : index
    %c0_61 = arith.constant 0 : index
    %142 = vector.load %arg13[%c0_60, %c0_61] : memref<1x32xf32, #tpu.memory_space<vmem>>, vector<1x32xf32>
    %143 = vector.broadcast %142 : vector<1x32xf32> to vector<8x32xf32>
    %144 = arith.addf %141, %143 : vector<8x32xf32>
    %145 = arith.addf %103, %144 : vector<8x32xf32>
    %c0_62 = arith.constant 0 : index
    %c0_63 = arith.constant 0 : index
    %c0_64 = arith.constant 0 : index
    %146 = vector.load %arg14[%c0_62, %c0_63, %c0_64] : memref<1x8x32xf32, #tpu.memory_space<vmem>>, vector<1x8x32xf32>
    %147 = vector.shape_cast %146 : vector<1x8x32xf32> to vector<8x32xf32>
    %148 = vector.shape_cast %145 : vector<8x32xf32> to vector<1x8x32xf32>
    tpu.vector_store %arg14[%c0_62, %c0_63, %c0_64], %148 {strides = array<i32>} : memref<1x8x32xf32, #tpu.memory_space<vmem>>, vector<1x8x32xf32>,
    return
  }
  func.func @transform_0(%arg0: i32) -> (i32, i32, i32) {
    %c0_i32 = arith.constant 0 : i32
    %c0_i32_0 = arith.constant 0 : i32
    %c0_i32_1 = arith.constant 0 : i32
    return %arg0, %c0_i32, %c0_i32_0 : i32, i32, i32
  }
  func.func @transform_1(%arg0: i32) -> (i32, i32) {
    %c0_i32 = arith.constant 0 : i32
    %c0_i32_0 = arith.constant 0 : i32
    %c0_i32_1 = arith.constant 0 : i32
    return %c0_i32, %c0_i32_0 : i32, i32
  }
  func.func @transform_2(%arg0: i32) -> (i32, i32) {
    %c0_i32 = arith.constant 0 : i32
    %c0_i32_0 = arith.constant 0 : i32
    %c0_i32_1 = arith.constant 0 : i32
    return %c0_i32, %c0_i32_0 : i32, i32
  }
  func.func @transform_3(%arg0: i32) -> (i32, i32) {
    %c0_i32 = arith.constant 0 : i32
    %c0_i32_0 = arith.constant 0 : i32
    %c0_i32_1 = arith.constant 0 : i32
    return %c0_i32, %c0_i32_0 : i32, i32
  }
  func.func @transform_4(%arg0: i32) -> (i32, i32) {
    %c0_i32 = arith.constant 0 : i32
    %c0_i32_0 = arith.constant 0 : i32
    %c0_i32_1 = arith.constant 0 : i32
    return %c0_i32, %c0_i32_0 : i32, i32
  }
  func.func @transform_5(%arg0: i32) -> (i32, i32) {
    %c0_i32 = arith.constant 0 : i32
    %c0_i32_0 = arith.constant 0 : i32
    %c0_i32_1 = arith.constant 0 : i32
    return %c0_i32, %c0_i32_0 : i32, i32
  }
  func.func @transform_6(%arg0: i32) -> (i32, i32) {
    %c0_i32 = arith.constant 0 : i32
    %c0_i32_0 = arith.constant 0 : i32
    %c0_i32_1 = arith.constant 0 : i32
    return %c0_i32, %c0_i32_0 : i32, i32
  }
  func.func @transform_7(%arg0: i32) -> (i32, i32) {
    %c0_i32 = arith.constant 0 : i32
    %c0_i32_0 = arith.constant 0 : i32
    %c0_i32_1 = arith.constant 0 : i32
    return %c0_i32, %c0_i32_0 : i32, i32
  }
  func.func @transform_8(%arg0: i32) -> (i32, i32) {
    %c0_i32 = arith.constant 0 : i32
    %c0_i32_0 = arith.constant 0 : i32
    %c0_i32_1 = arith.constant 0 : i32
    return %c0_i32, %c0_i32_0 : i32, i32
  }
  func.func @transform_9(%arg0: i32) -> (i32, i32) {
    %c0_i32 = arith.constant 0 : i32
    %c0_i32_0 = arith.constant 0 : i32
    %c0_i32_1 = arith.constant 0 : i32
    return %c0_i32, %c0_i32_0 : i32, i32
  }
  func.func @transform_10(%arg0: i32) -> (i32, i32) {
    %c0_i32 = arith.constant 0 : i32
    %c0_i32_0 = arith.constant 0 : i32
    %c0_i32_1 = arith.constant 0 : i32
    return %c0_i32, %c0_i32_0 : i32, i32
  }
  func.func @transform_11(%arg0: i32) -> (i32, i32) {
    %c0_i32 = arith.constant 0 : i32
    %c0_i32_0 = arith.constant 0 : i32
    %c0_i32_1 = arith.constant 0 : i32
    return %c0_i32, %c0_i32_0 : i32, i32
  }
  func.func @transform_12(%arg0: i32) -> (i32, i32) {
    %c0_i32 = arith.constant 0 : i32
    %c0_i32_0 = arith.constant 0 : i32
    %c0_i32_1 = arith.constant 0 : i32
    return %c0_i32, %c0_i32_0 : i32, i32
  }
  func.func @transform_13(%arg0: i32) -> (i32, i32, i32) {
    %c0_i32 = arith.constant 0 : i32
    %c0_i32_0 = arith.constant 0 : i32
    %c0_i32_1 = arith.constant 0 : i32
    return %arg0, %c0_i32, %c0_i32_0 : i32, i32, i32
  }
}

</mosaic_0001>

<bundles_post_ra>
// kernel: tpu_custom_call.1
= control target key start
LH: loop header
LB: loop body
LE: loop exit
PB: predicated region body
PF: predicated region fallthrough
CT: control target
= control target key end

     0   :  { %s1639_s0 = inlined_call_operand.vmem [shape: f32[2,8,32], index: 0, kind: input, shape index: {}]   ;;  %s1640_s1 = inlined_call_operand.vmem [shape: f32[1,32], index: 1, kind: input, shape index: {}]   ;;  %s1641_s2 = inlined_call_operand.vmem [shape: f32[1,32], index: 2, kind: input, shape index: {}]   ;;  %s1642_s3 = inlined_call_operand.vmem [shape: f32[32,96], index: 3, kind: input, shape index: {}]   ;;  %s1643_s4 = inlined_call_operand.vmem [shape: f32[1,96], index: 4, kind: input, shape index: {}]   ;;  %s1644_s5 = inlined_call_operand.vmem [shape: f32[32,32], index: 5, kind: input, shape index: {}]   ;;  %s1645_s6 = inlined_call_operand.vmem [shape: f32[1,32], index: 6, kind: input, shape index: {}]   ;;  %s1646_s7 = inlined_call_operand.vmem [shape: f32[1,32], index: 7, kind: input, shape index: {}]   ;;  %s1647_s8 = inlined_call_operand.vmem [shape: f32[1,32], index: 8, kind: input, shape index: {}]   ;;  %s1648_s9 = inlined_call_operand.vmem [shape: f32[32,128], index: 9, kind: input, shape index: {}]   ;;  %s1649_s10 = inlined_call_operand.vmem [shape: f32[1,128], index: 10, kind: input, shape index: {}]   ;;  %s1650_s11 = inlined_call_operand.vmem [shape: f32[128,32], index: 11, kind: input, shape index: {}]   ;;  %s1651_s12 = inlined_call_operand.vmem [shape: f32[1,32], index: 12, kind: input, shape index: {}]   ;;  %s1652_s13 = inlined_call_operand.hbm [shape: f32[2,8,32], index: 13, kind: output, shape index: {}]  }
   0x1   :  { %1653 = sst [smem:[#allocation5_spill]] %s1639_s0 }
   0x2   :  { %1654 = sst [smem:[#allocation6_spill]] %s1640_s1 }
   0x3   :  { %1655 = sst [smem:[#allocation7_spill]] %s1641_s2 }
   0x4   :  { %1656 = sst [smem:[#allocation8_spill]] %s1642_s3 }
   0x5   :  { %18 = vsyncpa [#allocation3], 0 }
   0x6   :  { %20 = vsyncpa [#allocation3 + $0x1], 0  ;;  %s1369_s25 = smov 0   ;;  %s1371_s26 = smov 0  }
   0x7   :  { %s1373_s27 = smov 0   ;;  %s1375_s28 = smov 0  }
   0x8 LB: > { %s1390_s29 = sadd.s32 4294967295, %s1281_s28   ;;  %s1104_s30 = sadd.s32 4294967294, %s1281_s28   ;;  %s1281_s28 = sphi %s1375_s28, %s1668_s28   ;;  %s1277_s27 = sphi %s1373_s27, %s1667_s27   ;;  %s1273_s26 = sphi %s1371_s26, %s1666_s26   ;;  %s1269_s25 = sphi %s1369_s25, %s1665_s25  }
   0x9   : > { %s1394_s14 = sadd.s32 1, %s1281_s28   ;;  %s311_s15 = sadd.s32 1, %s1277_s27 }
   0xa   : > { %s308_s16 = ssub.s32 %s1281_s28, %s1394_s14  ;;  %p321_p0 = scmp.ne.s32.totalorder %s1277_s27, %s1273_s26 }
   0xb   : > { %p309_p1 = scmp.eq.s32.totalorder %s308_s16, 0  ;;  %p322_p2 = scmp.eq.s32.totalorder %s1390_s29, 1 }
   0xc   : > { %p327_p3 = scmp.ne.s32.totalorder %s1273_s26, %s1269_s25  ;;  %p328_p4 = scmp.eq.s32.totalorder %s1104_s30, 1 }
   0xd   : > { %s1405_s17 = scalar_select %p309_p1, %s1277_s27, %s311_s15  }
   0xe   : > { %p1407_p5 = por %p322_p2, %p321_p0  ;;  %p1411_p6 = por %p328_p4, %p327_p3 }
   0xf   : > { %p1107_p7 = scmp.ge.s32.totalorder %s1281_s28, 1  ;;  %p389_p8 = scmp.lt.s32.totalorder %s1281_s28, 3 }
  0x11   : > { %p390_p9 = pnand %p1107_p7, %p389_p8 }
  0x12   : > { %p432_p10 = scmp.lt.s32.totalorder (!%p390_p9), %s1390_s29, 1  ;;  %s1659_s0 = sld [smem:[#allocation5_spill]] (!%p390_p9) }
  0x13   : > { %393 = sbr.rel (%p390_p9) target bundleno = 1930 (0x78a), region = 72  ;;  %s1660_s3 = sld [smem:[#allocation8_spill]] (!%p390_p9) }
  0x14   : > { %s1661_s1 = sld [smem:[#allocation6_spill]] (!%p390_p9)  ;;  %s1284_s23 = smov (!%p390_p9), 112  }
  0x15   : > { %s1662_s2 = sld [smem:[#allocation7_spill]] (!%p390_p9)  ;;  %s1286_s30 = smov (!%p390_p9), 96  }
  0x16   : > { %s1287_s15 = smov (!%p390_p9), 80   ;;  %s1288_s16 = smov (!%p390_p9), 88  }
  0x17   : > { %s1291_s22 = smov (!%p390_p9), 64  }
  0x18   : > { %s433_s20 = scalar_select %p432_p10, %s1390_s29, 1  ;;  %vm439_vm0 = vcmask 261120   ;;  %v1283_v2 = vmov 32.0   ;;  %v1187_v33 = vld [vmem:[%s1643_s4] ss:$0 sm:$0xff]  ;;  %vm511_vm5 = vcmask 64512  }
  0x19   : > { %1193 = vrcp.f32 %v1283_v2  ;;  %v480_v14 = vld [vmem:[%s1660_s3 + $0x18] sm:$0xff]  ;;  %v479_v15 = vld [vmem:[%s1660_s3 + $0x10] sm:$0xff]  ;;  %v478_v16 = vld [vmem:[%s1660_s3 + $0x8] sm:$0xff] }
  0x1a   : > { %s1109_s21 = sshll.u32 %s433_s20, 3  ;;  %500 = vmatpush.msra.mxu2 %v480_v14  ;;  %v477_v17 = vld [vmem:[%s1660_s3] sm:$0xff]  ;;  %s1289_s20 = smov 104  }
  0x1b   : > { %s435_s24 = scalar_lea.vmem %s1659_s0, %s1109_s21  ;;  %v1185_v27 = vld [vmem:[%s1661_s1] ss:$0 sm:$0xff]  ;;  %s1290_s21 = smov 72  }
  0x1c   : > { %v1422_v0 = vld [vmem:[%s435_s24] sm:$0xff]  ;;  %501 = vmatpush.msra.mxu2 %v479_v15  ;;  %s1285_s24 = smov 120   ;;  %s1127_s0 = sshll.u32 %s1390_s29, 3 }
  0x1d   : > { %v440_v1 = vsel %vm439_vm0, %v1422_v0, 0.0  ;;  %v1186_v30 = vld [vmem:[%s1662_s2] ss:$0 sm:$0xff] }
  0x1e   : > { %441 = vadd.xlane.f32.xlu0 %v440_v1  ;;  %502 = vmatpush.msra.mxu2 %v478_v16 }
  0x1f   : > { %v1194_v3 = vpop.eup %1193 }
  0x20   : > { %v444_v4 = vmul.f32 32.0, %v1194_v3  ;;  %vm448_vm1 = vweird.f32 %v1194_v3  ;;  %503 = vmatpush.msra.mxu2 %v477_v17 }
  0x22   : > { %v445_v5 = vsub.f32 1.0, %v444_v4 }
  0x24   : > { %v446_v6 = vmul.f32 %v1194_v3, %v445_v5 }
  0x26   : > { %v447_v7 = vadd.f32 %v1194_v3, %v446_v6 }
  0x28   : > { %v1426_v8 = vsel %vm448_vm1, %v1194_v3, %v447_v7 }
  0x91   : > { %v442_v9 = vpop.xlane.xlu0 %441 }
  0x92   : > { %v450_v10 = vmul.f32 %v1426_v8, %v442_v9 }
  0x94   : > { %v451_v11 = vsub.f32 %v1422_v0, %v450_v10 }
  0x96   : > { %v452_v12 = vmul.f32 %v451_v11, %v451_v11 }
  0x98   : > { %v453_v13 = vsel %vm439_vm0, %v452_v12, 0.0 }
  0x99   : > { %454 = vadd.xlane.f32.xlu0 %v453_v13 }
 0x10c   : > { %v455_v18 = vpop.xlane.xlu0 %454 }
 0x10d   : > { %v456_v19 = vmul.f32 %v455_v18, %v1426_v8 }
 0x10f   : > { %v457_v20 = vadd.f32 1e-05, %v456_v19 }
 0x111   : > { %1195 = vrsqrt.f32 %v457_v20  ;;  %vm464_vm3 = vweird.f32 %v457_v20 }
 0x117   : > { %v1196_v21 = vpop.eup %1195 }
 0x118   : > { %v459_v22 = vmul.f32 %v1196_v21, %v457_v20  ;;  %vm465_vm2 = vweird.f32 %v1196_v21 }
 0x119   : > { %vm466_vm4 = vmor %vm464_vm3, %vm465_vm2 }
 0x11a   : > { %v460_v23 = vmul.f32 %v1196_v21, %v459_v22 }
 0x11c   : > { %v461_v24 = vmul.f32 0.5, %v460_v23 }
 0x11e   : > { %v462_v25 = vsub.f32 1.5, %v461_v24 }
 0x120   : > { %v463_v26 = vmul.f32 %v1196_v21, %v462_v25 }
 0x122   : > { %v467_v28 = vsel %vm466_vm4, %v1196_v21, %v463_v26 }
 0x123   : > { %v468_v29 = vmul.f32 %v467_v28, %v451_v11 }
 0x125   : > { %v472_v31 = vmul.f32 %v1185_v27, %v468_v29 }
 0x127   : > { %v476_v32 = vadd.f32 %v1186_v30, %v472_v31 }
 0x129   : > { %1110 = vmatmul.msk.f32.vlgmr.msra.gmra.mxu2 %vm439_vm0, %v476_v32 }
 0x1ac   : > { %v505_v34 = vpop.f32.mrf.mxu2 }
 0x1ad   : > { %v1454_v35 = vadd.f32 %v1187_v33, %v505_v34 }
 0x1af   : > { %666 = vrot.lane.b32.xlu0 %v1454_v35, %s1284_s23  ;;  %587 = vrot.lane.b32.xlu2 %v1454_v35, %s1285_s24  ;;  %s1292_s23 = smov 56   ;;  %s1293_s24 = smov 40  }
 0x1b0   : > { %509 = vrot.lane.b32.xlu1 %v1454_v35, %s1286_s30  ;;  %s1294_s30 = smov 48  }
 0x1b7   : > { %668 = vrot.lane.b32.xlu2 %v1454_v35, %s1287_s15  ;;  %s1295_s15 = smov 8  }
 0x1b8   : > { %589 = vrot.lane.b32.xlu1 %v1454_v35, %s1288_s16  ;;  %s1296_s16 = smov 24  }
 0x1bf   : > { %745 = vrot.lane.b32.xlu2 %v1454_v35, %s1289_s20  ;;  %s1297_s20 = smov 16  }
 0x1c0   : > { %747 = vrot.lane.b32.xlu1 %v1454_v35, %s1290_s21 }
 0x209   : > { %v588_v36 = vpop.permute.xlu2 %587 }
 0x211   : > { %v669_v38 = vpop.permute.xlu2 %668 }
 0x219   : > { %v746_v42 = vpop.permute.xlu2 %745 }
 0x221   : > { %v667_v40 = vpop.permute.xlu0 %666 }
 0x222   : > { %v510_v37 = vpop.permute.xlu1 %509 }
 0x223   : > { %1111 = vmatpush.xpose.msk.msra.mxu1 %vm511_vm5, %v510_v37 }
 0x226   : > { %1112 = vmatmul.msk.f32.vlgmr.msra.gmra.mxu1 %vm511_vm5, %v1454_v35 }
 0x227   : > { %1117 = vmatpush.xpose.msk.msrb.mxu1 %vm511_vm5, %v669_v38 }
 0x22a   : > { %v590_v39 = vpop.permute.xlu1 %589 }
 0x22b   : > { %1114 = vmatpush.xpose.msk.msra.mxu3 %vm511_vm5, %v590_v39 }
 0x22e   : > { %1115 = vmatmul.msk.f32.vlgmr.msra.gmra.mxu3 %vm511_vm5, %v588_v36  ;;  %1118 = vmatmul.msk.f32.vlgmr.msrb.gmra.mxu1 %vm511_vm5, %v667_v40 }
 0x232   : > { %v748_v41 = vpop.permute.xlu1 %747 }
 0x233   : > { %1120 = vmatpush.xpose.msk.msra.mxu1 %vm511_vm5, %v748_v41 }
 0x236   : > { %1121 = vmatmul.msk.f32.vlgmr.msra.gmra.mxu1 %vm511_vm5, %v746_v42 }
 0x2a3   : > { %v533_v43 = vpop.f32.mrf.mxu1 }
 0x2a4   : > { %v536_v44 = vmul.f32 0.35355338, %v533_v43 }
 0x2a6   : > { %v537_v45 = vsel %vm511_vm5, %v536_v44, -inf }
 0x2a7   : > { %538 = vmax.xlane.f32.xlu1 %v537_v45 }
 0x2ab   : > { %v691_v46 = vpop.f32.mrf.mxu1 }
 0x2ac   : > { %v694_v47 = vmul.f32 0.35355338, %v691_v46 }
 0x2ae   : > { %v695_v48 = vsel %vm511_vm5, %v694_v47, -inf }
 0x2af   : > { %696 = vmax.xlane.f32.xlu0 %v695_v48 }
 0x2b1   : > { %v612_v49 = vpop.f32.mrf.mxu3 }
 0x2b2   : > { %v615_v50 = vmul.f32 0.35355338, %v612_v49 }
 0x2b3   : > { %v770_v52 = vpop.f32.mrf.mxu1 }
 0x2b4   : > { %v616_v51 = vsel %vm511_vm5, %v615_v50, -inf  ;;  %v773_v53 = vmul.f32 0.35355338, %v770_v52  ;;  %v1000_v52 = vld [vmem:[%s1650_s11 + $0x68] sm:$0xff] }
 0x2b5   : > { %617 = vmax.xlane.f32.xlu2 %v616_v51 }
 0x2b6   : > { %v774_v54 = vsel %vm511_vm5, %v773_v53, -inf }
 0x2bd   : > { %775 = vmax.xlane.f32.xlu2 %v774_v54 }
 0x2d5   : > { %561 = vrot.lane.b32.xlu2 %v1454_v35, %s1291_s22  ;;  %s1040_s22 = scalar_lea.hbm %s1652_s13, %s1127_s0 }
 0x2d6   : > { %s1044_s2 = sshll.u32 %s1040_s22, 4  ;;  %s1045_s2 = int_to_ptr.hbm [resolvable:$true] %s1044_s2 }
 0x2d7   : > { %s1233_s3 = sshra.s32 %s1045_s2, 4  ;;  %s1234_s3 = int_to_ptr.hbm [resolvable:$true] %s1233_s3 }
 0x2d8   : > { %p1240_p0 = scmp.lt.s32.totalorder %s1234_s3, %s1652_s13 }
 0x31a   : > { %v539_v55 = vpop.xlane.xlu1 %538 }
 0x31b   : > { %v540_v56 = vsub.f32 %v536_v44, %v539_v55 }
 0x31d   : > { %v541_v57 = vmul.f32 1.442695, %v540_v56 }
 0x31f   : > { %1197 = vpow2.f32 %v541_v57 }
 0x322   : > { %v697_v58 = vpop.xlane.xlu0 %696 }
 0x323   : > { %v698_v59 = vsub.f32 %v694_v47, %v697_v58 }
 0x325   : > { %v1198_v60 = vpop.eup %1197  ;;  %v699_v61 = vmul.f32 1.442695, %v698_v59 }
 0x326   : > { %v543_v62 = vsel %vm511_vm5, %v1198_v60, 0.0 }
 0x327   : > { %1199 = vpow2.f32 %v699_v61  ;;  %544 = vadd.xlane.f32.xlu1 %v543_v62 }
 0x328   : > { %v618_v63 = vpop.xlane.xlu2 %617 }
 0x329   : > { %v619_v1 = vsub.f32 %v615_v50, %v618_v63 }
 0x32b   : > { %v620_v2 = vmul.f32 1.442695, %v619_v1 }
 0x32d   : > { %v1478_v3 = vpop.eup %1199  ;;  %1201 = vpow2.f32 %v620_v2 }
 0x32e   : > { %v701_v4 = vsel %vm511_vm5, %v1478_v3, 0.0 }
 0x32f   : > { %702 = vadd.xlane.f32.xlu1 %v701_v4 }
 0x330   : > { %v776_v5 = vpop.xlane.xlu2 %775 }
 0x331   : > { %v777_v6 = vsub.f32 %v773_v53, %v776_v5 }
 0x333   : > { %v1482_v7 = vpop.eup %1201  ;;  %v778_v9 = vmul.f32 1.442695, %v777_v6 }
 0x334   : > { %v622_v10 = vsel %vm511_vm5, %v1482_v7, 0.0 }
 0x335   : > { %1203 = vpow2.f32 %v778_v9  ;;  %623 = vadd.xlane.f32.xlu2 %v622_v10  ;;  %v844_v9 = vld [vmem:[%s1644_s5 + $0x18] sm:$0xff]  ;;  %v842_v10 = vld [vmem:[%s1644_s5 + $0x8] sm:$0xff] }
 0x336   : > { %864 = vmatpush.msrb.mxu1 %v844_v9 }
 0x338   : > { %v562_v11 = vpop.permute.xlu2 %561 }
 0x339   : > { %582 = vmatpush.msrb.mxu2 %v562_v11  ;;  %v841_v11 = vld [vmem:[%s1644_s5] sm:$0xff] }
 0x33b   : > { %v1486_v12 = vpop.eup %1203 }
 0x33c   : > { %v780_v13 = vsel %vm511_vm5, %v1486_v12, 0.0 }
 0x33d   : > { %781 = vadd.xlane.f32.xlu0 %v780_v13 }
 0x348   : > { %640 = vrot.lane.b32.xlu1 %v1454_v35, %s1292_s23 }
 0x34d   : > { %798 = vrot.lane.b32.xlu2 %v1454_v35, %s1293_s24 }
 0x351   : > { %719 = vrot.lane.b32.xlu0 %v1454_v35, %s1294_s30  ;;  %s429_s30 = sand.u32 1, %s1273_s26  }
 0x352   : > { %s1030_s29 = scalar_lea.sflag [#allocation3], %s429_s30 }
 0x39a   : > { %v545_v14 = vpop.xlane.xlu1 %544 }
 0x39b   : > { %1205 = vrcp.f32 %v545_v14  ;;  %v557_v19 = vand.u32 2147483648, %v545_v14  ;;  %v555_v21 = vand.u32 2147483647, %v545_v14  ;;  %vm551_vm7 = vweird.f32 %v545_v14 }
 0x39d   : > { %v558_v24 = vor.u32 1.1754944e-38, %v557_v19  ;;  %vm556_vm9 = vcmp.eq.f32.partialorder %v555_v21, 8.507059e+37 }
 0x3a1   : > { %v1206_v15 = vpop.eup %1205 }
 0x3a2   : > { %v547_v16 = vmul.f32 %v1206_v15, %v545_v14  ;;  %v703_v17 = vpop.xlane.xlu1 %702  ;;  %vm552_vm6 = vweird.f32 %v1206_v15 }
 0x3a3   : > { %1207 = vrcp.f32 %v703_v17  ;;  %vm553_vm8 = vmor %vm551_vm7, %vm552_vm6  ;;  %v715_v46 = vand.u32 2147483648, %v703_v17  ;;  %vm709_vm15 = vweird.f32 %v703_v17  ;;  %v713_v50 = vand.u32 2147483647, %v703_v17 }
 0x3a4   : > { %v548_v18 = vsub.f32 1.0, %v547_v16 }
 0x3a5   : > { %v716_v57 = vor.u32 1.1754944e-38, %v715_v46  ;;  %vm714_vm4 = vcmp.eq.f32.partialorder %v713_v50, 8.507059e+37 }
 0x3a6   : > { %v549_v20 = vmul.f32 %v1206_v15, %v548_v18  ;;  %v1188_v18 = vld [vmem:[%s1645_s6] ss:$0 sm:$0xff] }
 0x3a8   : > { %v550_v22 = vadd.f32 %v1206_v15, %v549_v20  ;;  %v624_v23 = vpop.xlane.xlu2 %623 }
 0x3a9   : > { %1209 = vrcp.f32 %v624_v23  ;;  %v1208_v25 = vpop.eup %1207  ;;  %v636_v35 = vand.u32 2147483648, %v624_v23  ;;  %v634_v37 = vand.u32 2147483647, %v624_v23  ;;  %vm630_vm11 = vweird.f32 %v624_v23 }
 0x3aa   : > { %v554_v26 = vsel %vm553_vm8, %v1206_v15, %v550_v22  ;;  %v705_v29 = vmul.f32 %v1208_v25, %v703_v17  ;;  %vm710_vm14 = vweird.f32 %v1208_v25  ;;  %vm837_vm8 = vcmask 130048  }
 0x3ab   : > { %v559_v27 = vsel %vm556_vm9, %v558_v24, %v554_v26  ;;  %v637_v41 = vor.u32 1.1754944e-38, %v636_v35  ;;  %vm635_vm13 = vcmp.eq.f32.partialorder %v634_v37, 8.507059e+37  ;;  %vm1495_vm1 = vmor %vm709_vm15, %vm710_vm14  ;;  %vm839_vm9 = vcmask 195584  }
 0x3ac   : > { %v560_v28 = vmul.f32 %v1198_v60, %v559_v27  ;;  %v706_v33 = vsub.f32 1.0, %v705_v29  ;;  %v906_v29 = vld [vmem:[%s1648_s9 + $0x8] sm:$0xff] }
 0x3ae   : > { %1113 = vmatmul.msk.f32.vlgmr.msrb.gmra.mxu2 %vm511_vm5, %v560_v28  ;;  %v707_v38 = vmul.f32 %v1208_v25, %v706_v33  ;;  %v908_v28 = vld [vmem:[%s1648_s9 + $0x18] sm:$0xff] }
 0x3af   : > { %v1210_v30 = vpop.eup %1209 }
 0x3b0   : > { %v626_v31 = vmul.f32 %v1210_v30, %v624_v23  ;;  %v782_v32 = vpop.xlane.xlu0 %781  ;;  %vm631_vm10 = vweird.f32 %v1210_v30  ;;  %v708_v44 = vadd.f32 %v1208_v25, %v707_v38  ;;  %v799_v55 = vpop.permute.xlu2 %798 }
 0x3b1   : > { %1211 = vrcp.f32 %v782_v32  ;;  %vm632_vm12 = vmor %vm630_vm11, %vm631_vm10  ;;  %v794_v51 = vand.u32 2147483648, %v782_v32  ;;  %v792_v54 = vand.u32 2147483647, %v782_v32  ;;  %vm788_vm3 = vweird.f32 %v782_v32 }
 0x3b2   : > { %v627_v34 = vsub.f32 1.0, %v626_v31  ;;  %v712_v56 = vsel %vm1495_vm1, %v1208_v25, %v708_v44 }
 0x3b3   : > { %v795_v59 = vor.u32 1.1754944e-38, %v794_v51  ;;  %vm793_vm7 = vcmp.eq.f32.partialorder %v792_v54, 8.507059e+37  ;;  %v717_v61 = vsel %vm714_vm4, %v716_v57, %v712_v56  ;;  %v1001_v51 = vld [vmem:[%s1650_s11 + $0x70] sm:$0xff]  ;;  %v1191_v54 = vld [vmem:[%s1649_s10] ss:$0 sm:$0xff]  ;;  %v998_v56 = vld [vmem:[%s1650_s11 + $0x58] sm:$0xff] }
 0x3b4   : > { %v628_v36 = vmul.f32 %v1210_v30, %v627_v34  ;;  %v718_v2 = vmul.f32 %v1478_v3, %v717_v61  ;;  %v843_v3 = vld [vmem:[%s1644_s5 + $0x10] sm:$0xff]  ;;  %v996_v61 = vld [vmem:[%s1650_s11 + $0x48] sm:$0xff] }
 0x3b5   : > { %865 = vmatpush.msrb.mxu1 %v843_v3  ;;  %v997_v57 = vld [vmem:[%s1650_s11 + $0x50] sm:$0xff] }
 0x3b6   : > { %v629_v39 = vadd.f32 %v1210_v30, %v628_v36 }
 0x3b7   : > { %v1212_v40 = vpop.eup %1211  ;;  %866 = vmatpush.msrb.mxu1 %v842_v10  ;;  %v991_v10 = vld [vmem:[%s1650_s11 + $0x20] sm:$0xff] }
 0x3b8   : > { %v633_v42 = vsel %vm632_vm12, %v1210_v30, %v629_v39  ;;  %v784_v43 = vmul.f32 %v1212_v40, %v782_v32  ;;  %vm789_vm2 = vweird.f32 %v1212_v40  ;;  %v905_v30 = vld [vmem:[%s1648_s9] sm:$0xff] }
 0x3b9   : > { %v638_v45 = vsel %vm635_vm13, %v637_v41, %v633_v42  ;;  %vm790_vm6 = vmor %vm788_vm3, %vm789_vm2  ;;  %867 = vmatpush.msrb.mxu1 %v841_v11 }
 0x3ba   : > { %v785_v47 = vsub.f32 1.0, %v784_v43  ;;  %v641_v48 = vpop.permute.xlu1 %640  ;;  %v639_v49 = vmul.f32 %v1482_v7, %v638_v45  ;;  %v1298_v45 = vmov 1.4142135  }
 0x3bb   : > { %661 = vmatpush.msra.mxu2 %v641_v48 }
 0x3bc   : > { %v786_v53 = vmul.f32 %v1212_v40, %v785_v47  ;;  %1116 = vmatmul.msk.f32.vlgmr.msra.gmra.mxu2 %vm511_vm5, %v639_v49  ;;  %v1002_v49 = vld [vmem:[%s1650_s11 + $0x78] sm:$0xff] }
 0x3bd   : > { %819 = vmatpush.msrb.mxu2 %v799_v55  ;;  %1007 = vmatpush.msra.mxu0 %v1002_v49  ;;  %v999_v55 = vld [vmem:[%s1650_s11 + $0x60] sm:$0xff] }
 0x3be   : > { %v787_v58 = vadd.f32 %v1212_v40, %v786_v53 }
 0x3bf   : > { %1008 = vmatpush.msra.mxu0 %v1001_v51 }
 0x3c0   : > { %v791_v60 = vsel %vm790_vm6, %v1212_v40, %v787_v58  ;;  %v1189_v40 = vld [vmem:[%s1646_s7] ss:$0 sm:$0xff] }
 0x3c1   : > { %v796_v62 = vsel %vm793_vm7, %v795_v59, %v791_v60  ;;  %1009 = vmatpush.msra.mxu0 %v1000_v52 }
 0x3c2   : > { %v797_v63 = vmul.f32 %v1486_v12, %v796_v62 }
 0x3c3   : > { %v720_v1 = vpop.permute.xlu0 %719  ;;  %1010 = vmatpush.msra.mxu0 %v999_v55 }
 0x3c4   : > { %740 = vmatpush.msrb.mxu3 %v720_v1  ;;  %1122 = vmatmul.msk.f32.vlgmr.msrb.gmra.mxu2 %vm511_vm5, %v797_v63  ;;  %v995_v63 = vld [vmem:[%s1650_s11 + $0x40] sm:$0xff] }
 0x3c5   : > { %1119 = vmatmul.msk.f32.vlgmr.msrb.gmra.mxu3 %vm511_vm5, %v718_v2  ;;  %1011 = vmatpush.msra.mxu0 %v998_v56  ;;  %v994_v2 = vld [vmem:[%s1650_s11 + $0x38] sm:$0xff] }
 0x3c6   : > { %928 = vmatpush.msra.mxu3 %v908_v28 }
 0x3c7   : > { %1012 = vmatpush.msra.mxu0 %v997_v57 }
 0x3c9   : > { %1013 = vmatpush.msra.mxu0 %v996_v61 }
 0x3cb   : > { %1014 = vmatpush.msra.mxu0 %v995_v63 }
 0x3cd   : > { %1015 = vmatpush.msra.mxu0 %v994_v2 }
 0x431   : > { %v584_v4 = vpop.f32.mrf.mxu2 }
 0x43f   : > { %v663_v5 = vpop.f32.mrf.mxu2 }
 0x440   : > { %825 = vrot.lane.b32.xlu0 %v663_v5, %s1295_s15  ;;  %v993_v5 = vld [vmem:[%s1650_s11 + $0x30] sm:$0xff]  ;;  %s1108_s15 = sshll.u32 %s429_s30, 3 }
 0x441   : > { %1016 = vmatpush.msra.mxu0 %v993_v5  ;;  %s431_s23 = scalar_lea.vmem [#allocation2], %s1108_s15  ;;  %s1239_s15 = scalar_lea.hbm %s1652_s13, 16 }
 0x442   : > { %s1042_s24 = sshll.u32 %s431_s23, 4  ;;  %s1043_s24 = int_to_ptr.vmem [resolvable:$true] %s1042_s24 }
 0x447   : > { %v821_v6 = vpop.f32.mrf.mxu2 }
 0x448   : > { %v742_v7 = vpop.f32.mrf.mxu3  ;;  %833 = vrot.lane.b32.xlu2 %v821_v6, %s1296_s16  ;;  %s1235_s16 = scalar_lea.hbm %s1234_s3, 8 }
 0x449   : > { %829 = vrot.lane.b32.xlu1 %v742_v7, %s1297_s20  ;;  %v992_v7 = vld [vmem:[%s1650_s11 + $0x28] sm:$0xff]  ;;  %p1236_p11 = scmp.ne.s32.totalorder %s1234_s3, %s1235_s16  ;;  %p1241_p1 = scmp.lt.s32.totalorder %s1239_s15, %s1235_s16 }
 0x44a   : > { %1017 = vmatpush.msra.mxu0 %v992_v7 }
 0x44b   : > { %p1237_p12 = pnand %p1236_p11, %p1407_p5  ;;  %p1242_p2 = por %p1241_p1, %p1240_p0 }
 0x44c   : > { %1018 = vmatpush.msra.mxu0 %v991_v10 }
 0x44d   : > { %p1238_p13 = pneg %p1237_p12 }
 0x44f   : > { %p1243_p3 = pnand %p1242_p2, %p1238_p13 }
 0x4a2   : > { %v834_v15 = vpop.permute.xlu2 %833 }
 0x4b2   : > { %v826_v12 = vpop.permute.xlu0 %825 }
 0x4b3   : > { %v836_v13 = vsel %vm511_vm5, %v584_v4, %v826_v12 }
 0x4bb   : > { %v830_v14 = vpop.permute.xlu1 %829 }
 0x4bc   : > { %v838_v16 = vsel %vm837_vm8, %v836_v13, %v830_v14  ;;  %v990_v13 = vld [vmem:[%s1650_s11 + $0x18] sm:$0xff] }
 0x4bd   : > { %v840_v17 = vsel %vm839_vm9, %v838_v16, %v834_v15  ;;  %v989_v15 = vld [vmem:[%s1650_s11 + $0x10] sm:$0xff]  ;;  %1019 = vmatpush.msra.mxu0 %v990_v13 }
 0x4be   : > { %1123 = vmatmul.msk.f32.vlgmr.msrb.gmra.mxu1 %vm439_vm0, %v840_v17 }
 0x4bf   : > { %1020 = vmatpush.msra.mxu0 %v989_v15 }
 0x53b   : > { %v869_v19 = vpop.f32.mrf.mxu1 }
 0x53c   : > { %v870_v20 = vadd.f32 %v1188_v18, %v869_v19  ;;  %v988_v18 = vld [vmem:[%s1650_s11 + $0x8] sm:$0xff] }
 0x53d   : > { %1021 = vmatpush.msra.mxu0 %v988_v18 }
 0x53e   : > { %v1524_v21 = vadd.f32 %v870_v20, %v1422_v0  ;;  %v907_v0 = vld [vmem:[%s1648_s9 + $0x10] sm:$0xff]  ;;  %v987_v20 = vld [vmem:[%s1650_s11] sm:$0xff] }
 0x53f   : > { %929 = vmatpush.msra.mxu3 %v907_v0  ;;  %1022 = vmatpush.msra.mxu0 %v987_v20 }
 0x540   : > { %v875_v22 = vsel %vm439_vm0, %v1524_v21, 0.0 }
 0x541   : > { %876 = vadd.xlane.f32.xlu0 %v875_v22  ;;  %930 = vmatpush.msra.mxu3 %v906_v29 }
 0x543   : > { %931 = vmatpush.msra.mxu3 %v905_v30 }
 0x5b4   : > { %v877_v23 = vpop.xlane.xlu0 %876 }
 0x5b5   : > { %v878_v24 = vmul.f32 %v877_v23, %v1426_v8 }
 0x5b7   : > { %v879_v25 = vsub.f32 %v1524_v21, %v878_v24 }
 0x5b9   : > { %v880_v26 = vmul.f32 %v879_v25, %v879_v25 }
 0x5bb   : > { %v881_v27 = vsel %vm439_vm0, %v880_v26, 0.0 }
 0x5bc   : > { %882 = vadd.xlane.f32.xlu1 %v881_v27 }
 0x62f   : > { %v883_v31 = vpop.xlane.xlu1 %882 }
 0x630   : > { %v884_v32 = vmul.f32 %v883_v31, %v1426_v8  ;;  %v1190_v8 = vld [vmem:[%s1647_s8] ss:$0 sm:$0xff] }
 0x632   : > { %v885_v33 = vadd.f32 1e-05, %v884_v32 }
 0x634   : > { %1213 = vrsqrt.f32 %v885_v33  ;;  %vm892_vm10 = vweird.f32 %v885_v33 }
 0x635   : > { %1215 = vrcp.f32 %v1298_v45 }
 0x63a   : > { %v1214_v34 = vpop.eup %1213 }
 0x63b   : > { %v887_v35 = vmul.f32 %v1214_v34, %v885_v33  ;;  %vm893_vm5 = vweird.f32 %v1214_v34  ;;  %v1216_v46 = vpop.eup %1215 }
 0x63c   : > { %vm894_vm11 = vmor %vm892_vm10, %vm893_vm5  ;;  %v938_v47 = vmul.f32 1.4142135, %v1216_v46  ;;  %vm942_vm12 = vweird.f32 %v1216_v46 }
 0x63d   : > { %v888_v36 = vmul.f32 %v1214_v34, %v887_v35 }
 0x63e   : > { %v939_v48 = vsub.f32 1.0, %v938_v47  ;;  %v1192_v47 = vld [vmem:[%s1651_s12] ss:$0 sm:$0xff] }
 0x63f   : > { %v889_v37 = vmul.f32 0.5, %v888_v36 }
 0x640   : > { %v940_v50 = vmul.f32 %v1216_v46, %v939_v48 }
 0x641   : > { %v890_v38 = vsub.f32 1.5, %v889_v37 }
 0x642   : > { %v941_v53 = vadd.f32 %v1216_v46, %v940_v50 }
 0x643   : > { %v891_v39 = vmul.f32 %v1214_v34, %v890_v38 }
 0x644   : > { %v943_v59 = vsel %vm942_vm12, %v1216_v46, %v941_v53 }
 0x645   : > { %v895_v41 = vsel %vm894_vm11, %v1214_v34, %v891_v39 }
 0x646   : > { %v896_v42 = vmul.f32 %v895_v41, %v879_v25 }
 0x648   : > { %v900_v43 = vmul.f32 %v1189_v40, %v896_v42 }
 0x64a   : > { %v904_v44 = vadd.f32 %v1190_v8, %v900_v43 }
 0x64c   : > { %1124 = vmatmul.msk.f32.vlgmr.msra.gmra.mxu3 %vm439_vm0, %v904_v44 }
 0x6cf   : > { %v933_v58 = vpop.f32.mrf.mxu3 }
 0x6d0   : > { %v934_v60 = vadd.f32 %v1191_v54, %v933_v58 }
 0x6d2   : > { %v944_v62 = vmul.f32 %v943_v59, %v934_v60  ;;  %v936_v44 = vmul.f32 0.5, %v934_v60 }
 0x6d4   : > { %v945_v1 = vmul.f32 %v944_v62, %v944_v62 }
 0x6d6   : > { %v946_v4 = vmin.f32 %v945_v1, 16.0 }
 0x6d8   : > { %v947_v6 = vmul.f32 2.1237322e-06, %v946_v4  ;;  %v958_v9 = vmul.f32 3.8918573e-05, %v946_v4 }
 0x6da   : > { %v948_v3 = vadd.f32 0.00028619796, %v947_v6  ;;  %v959_v11 = vadd.f32 0.001143296, %v958_v9 }
 0x6dc   : > { %v949_v12 = vmul.f32 %v948_v3, %v946_v4  ;;  %v960_v14 = vmul.f32 %v959_v11, %v946_v4 }
 0x6de   : > { %v961_v16 = vadd.f32 0.014752088, %v960_v14  ;;  %v950_v17 = vadd.f32 0.0036580483, %v949_v12 }
 0x6e0   : > { %v962_v19 = vmul.f32 %v961_v16, %v946_v4  ;;  %v951_v23 = vmul.f32 %v950_v17, %v946_v4 }
 0x6e2   : > { %v963_v22 = vadd.f32 0.112945676, %v962_v19  ;;  %v952_v26 = vadd.f32 0.05243302, %v951_v23 }
 0x6e4   : > { %v964_v24 = vmul.f32 %v963_v22, %v946_v4  ;;  %v953_v0 = vmul.f32 %v952_v26, %v946_v4 }
 0x6e6   : > { %v965_v25 = vadd.f32 0.4994258, %v964_v24  ;;  %v954_v29 = vadd.f32 0.18741608, %v953_v0 }
 0x6e8   : > { %v966_v27 = vmul.f32 %v965_v25, %v946_v4  ;;  %v955_v31 = vmul.f32 %v954_v29, %v946_v4 }
 0x6ea   : > { %v967_v28 = vadd.f32 1.0, %v966_v27  ;;  %v956_v35 = vadd.f32 1.1283791, %v955_v31 }
 0x6ec   : > { %1217 = vrcp.f32 %v967_v28  ;;  %v979_v34 = vand.u32 2147483648, %v967_v28  ;;  %v977_v37 = vand.u32 2147483647, %v967_v28  ;;  %vm973_vm14 = vweird.f32 %v967_v28 }
 0x6ed   : > { %v957_v40 = vmul.f32 %v956_v35, %v944_v62 }
 0x6ee   : > { %v980_v39 = vor.u32 1.1754944e-38, %v979_v34  ;;  %vm978_vm1 = vcmp.eq.f32.partialorder %v977_v37, 8.507059e+37 }
 0x6f2   : > { %v1218_v30 = vpop.eup %1217 }
 0x6f3   : > { %v969_v32 = vmul.f32 %v1218_v30, %v967_v28  ;;  %vm974_vm13 = vweird.f32 %v1218_v30 }
 0x6f4   : > { %vm975_vm15 = vmor %vm973_vm14, %vm974_vm13 }
 0x6f5   : > { %v970_v33 = vsub.f32 1.0, %v969_v32 }
 0x6f7   : > { %v971_v36 = vmul.f32 %v1218_v30, %v970_v33 }
 0x6f9   : > { %v972_v38 = vadd.f32 %v1218_v30, %v971_v36 }
 0x6fb   : > { %v976_v41 = vsel %vm975_vm15, %v1218_v30, %v972_v38 }
 0x6fc   : > { %v981_v42 = vsel %vm978_vm1, %v980_v39, %v976_v41 }
 0x6fd   : > { %v982_v8 = vmul.f32 %v981_v42, %v957_v40 }
 0x6ff   : > { %v1125_v43 = vclamps-f32 %v982_v8, 1.0 }
 0x701   : > { %v985_v45 = vadd.f32 1.0, %v1125_v43 }
 0x703   : > { %v986_v46 = vmul.f32 %v985_v45, %v936_v44 }
 0x705   : > { %1023 = vmatmul.f32.vlgmr.msra.gmra.mxu0 %v986_v46 }
 0x782   : > { %v1024_v48 = vpop.f32.mrf.mxu0 }
 0x783   : > { %v1025_v49 = vadd.f32 %v1192_v47, %v1024_v48 }
 0x785   : > { %v1027_v50 = vadd.f32 %v1025_v49, %v1524_v21 }
 0x787   : > { %1028 = vst.msk [vmem:[%s431_s23] sm:$0xff] %vm439_vm0, %v1027_v50 }
 0x788   : > { %1246 = shalt.err (!%p1243_p3)
}
 0x789   : > { %1130 = dma.vmem_to_hbm [thread:$0]  (%p1407_p5), %s1043_s24, 128, %s1045_s2, %s1030_s29  }
 0x78a PF: > { %p1136_p4 = scmp.ge.s32.totalorder %s1281_s28, 2  ;;  %s1056_s30 = sand.u32 1, %s1269_s25  }
 0x78b   : > { %s1057_s22 = scalar_lea.sflag [#allocation3], %s1056_s30 }
 0x78c   : > { %p1133_p7 = pnand %p1136_p4, %p1411_p6 }
 0x78e   : > { %p1134_p8 = pneg %p1133_p7 }
 0x790   : > { %1264 = dma.done.wait (%p1134_p8), %s1057_s22, 128  }
 0x791   : > { %1266 = vsyncadd (%p1134_p8), %s1057_s22, 4294967168  ;;  %p23_p9 = scmp.ge.s32.totalorder %s1394_s14, 4   ;;  %s1665_s25 = smov %s1273_s26 }
 0x792   : > { %s1666_s26 = smov %s1277_s27  ;;  %s1667_s27 = smov %s1405_s17 }
 0x793   : > { %s1668_s28 = smov %s1394_s14  ;;  %25 = sbr.rel (!%p23_p9) target bundleno = 8 (0x8), region = 107 }
 0x798   :  { %1063 = vsyncpa [#allocation3], 1 }
 0x799   :  { %1065 = vsyncpa [#allocation3 + $0x1], 1 }

</bundles_post_ra>
